<compile_context>
chip_gen: v5e
topology: v5e:2x2
jax: 0.10.0
libtpu: 0.0.40
codegen_flags: <defaults>
</compile_context>

<pallas_src>
import math

import jax
import jax.numpy as jnp
from jax import lax
from jax.experimental import pallas as pl
from jax.experimental.pallas import tpu as pltpu


def _round_up(n, m):
    return ((n + m - 1) // m) * m


def _mlp_kernel(x_ref, w1_ref, b1_ref, w2_ref, b2_ref, w3_ref, b3_ref,
                w4_ref, b4_ref, o_ref):
    """One batch tile.

    x_ref : (TILE_B, input_size) f32          natural layout, contiguous tile
    w*_ref: (out_features, in_features) bf16  PyTorch layout, VMEM-resident
    b*_ref: (out_features, 1) f32
    w4_ref: (32, 1) f32, b4_ref: (1, 1) f32
    o_ref : (1, TILE_B) f32                   lane-dense output row
    """
    # In-kernel bf16 cast of the batch tile (VPU); no wrapper-side relayout.
    x_bf = x_ref[...].astype(jnp.bfloat16)                       # (TILE_B, in)
    # fc1 + relu: NT contraction (both operands contract their minor dim);
    # result is feature-major (128, TILE_B), accumulated in f32 on the MXU.
    h = lax.dot_general(w1_ref[...], x_bf, (((1,), (1,)), ((), ())),
                        preferred_element_type=jnp.float32)
    h = jnp.maximum(h + b1_ref[...], 0.0)
    # dropout(p=0.2) -> identity (eval mode)
    # fc2 + relu
    h = jnp.dot(w2_ref[...], h.astype(jnp.bfloat16),
                preferred_element_type=jnp.float32)
    h = jnp.maximum(h + b2_ref[...], 0.0)
    # dropout(p=0.2) -> identity (eval mode)
    # fc3 + relu
    h = jnp.dot(w3_ref[...], h.astype(jnp.bfloat16),
                preferred_element_type=jnp.float32)
    h = jnp.maximum(h + b3_ref[...], 0.0)                        # (32, TILE_B)
    # fc4 (out_features = 1): VPU multiply + XLU sublane-reduce instead of a
    # degenerate M=1 MXU matmul; result is already lane-dense (1, TILE_B).
    out = jnp.sum(h * w4_ref[...], axis=0, keepdims=True) + b4_ref[...]
    o_ref[...] = out.astype(o_ref.dtype)


def _choose_tile(batch, requested):
    """Pick a batch tile that is (8,128)-legal, big enough to amortize the
    ~0.35 us per-grid-step overhead, and that leaves >= 2 grid steps when the
    batch allows it so v7x's two TensorCores both get work."""
    if batch <= 128:
        return batch                               # single full-extent block
    tile = max(128, (min(requested, batch) // 128) * 128)
    if pl.cdiv(batch, tile) < 2 and batch >= 256:  # keep both v7x TCs busy
        tile = max(128, _round_up(pl.cdiv(batch, 2), 128))
    return tile


def house_price_nn_forward(x, params, *, tile_b=4096):
    """x: (batch, input_size) float32, natural layout.
    params: PyTorch-layout weights (out, in) and biases (out,)."""
    batch, input_size = x.shape
    tile = _choose_tile(batch, tile_b)
    num_tiles = pl.cdiv(batch, tile)

    # Weights/biases: tiny, cast once (bf16 MXU operands; f32 biases / fc4).
    w1 = params["w1"].astype(jnp.bfloat16)                    # (128, in)
    w2 = params["w2"].astype(jnp.bfloat16)                    # (64, 128)
    w3 = params["w3"].astype(jnp.bfloat16)                    # (32, 64)
    w4 = params["w4"].reshape(-1, 1).astype(jnp.float32)      # (32, 1) (VPU)
    b1 = params["b1"].reshape(-1, 1).astype(jnp.float32)      # (128, 1)
    b2 = params["b2"].reshape(-1, 1).astype(jnp.float32)      # (64, 1)
    b3 = params["b3"].reshape(-1, 1).astype(jnp.float32)      # (32, 1)
    b4 = params["b4"].reshape(1, 1).astype(jnp.float32)       # (1, 1)

    flops = 2 * batch * (input_size * 128 + 128 * 64 + 64 * 32 + 32 * 1)
    bytes_accessed = (
        batch * input_size * 4 + batch * 4
        + 2 * (w1.size + w2.size + w3.size)
        + 4 * (w4.size + b1.size + b2.size + b3.size + b4.size))

    out_row = pl.pallas_call(
        _mlp_kernel,
        out_shape=jax.ShapeDtypeStruct((1, batch), jnp.float32),
        grid=(num_tiles,),
        in_specs=[
            pl.BlockSpec((tile, input_size), lambda i: (i, 0)),  # x tile
            pl.BlockSpec((128, input_size), lambda i: (0, 0)),   # w1 (resident)
            pl.BlockSpec((128, 1), lambda i: (0, 0)),            # b1
            pl.BlockSpec((64, 128), lambda i: (0, 0)),           # w2
            pl.BlockSpec((64, 1), lambda i: (0, 0)),             # b2
            pl.BlockSpec((32, 64), lambda i: (0, 0)),            # w3
            pl.BlockSpec((32, 1), lambda i: (0, 0)),             # b3
            pl.BlockSpec((32, 1), lambda i: (0, 0)),             # w4 (column)
            pl.BlockSpec((1, 1), lambda i: (0, 0)),              # b4
        ],
        out_specs=pl.BlockSpec((1, tile), lambda i: (0, i)),
        compiler_params=pltpu.CompilerParams(
            dimension_semantics=("parallel",),
            vmem_limit_bytes=48 * 1024 * 1024),
        cost_estimate=pl.CostEstimate(
            flops=flops, transcendentals=0, bytes_accessed=bytes_accessed),
    )(x.astype(jnp.float32), w1, b1, w2, b2, w3, b3, w4, b4)

    # Lane-dense (1, batch) row -> (batch, 1); layout plumbing only.
    return out_row[0, :].reshape(batch, 1)


def init_params(key, input_size):
    """PyTorch nn.Linear default init: U(-1/sqrt(fan_in), 1/sqrt(fan_in)) for
    weight and bias; weights in PyTorch layout (out_features, in_features)."""
    dims = [(input_size, 128), (128, 64), (64, 32), (32, 1)]
    params = {}
    keys = jax.random.split(key, 2 * len(dims))
    for i, (fan_in, fan_out) in enumerate(dims):
        bound = 1.0 / math.sqrt(fan_in)
        params[f"w{i + 1}"] = jax.random.uniform(
            keys[2 * i], (fan_out, fan_in), minval=-bound, maxval=bound,
            dtype=jnp.float32)
        params[f"b{i + 1}"] = jax.random.uniform(
            keys[2 * i + 1], (fan_out,), minval=-bound, maxval=bound,
            dtype=jnp.float32)
    return params


def reference_forward(x, params):
    """Pure-JAX reference emulating the kernel's numerics (bf16 MXU operands,
    f32 accumulation, f32 elementwise, f32 final layer)."""
    def lin(h, w, b):
        return jnp.dot(h.astype(jnp.bfloat16), w.T.astype(jnp.bfloat16),
                       preferred_element_type=jnp.float32) + b
    h = jnp.maximum(lin(x, params["w1"], params["b1"]), 0.0)
    h = jnp.maximum(lin(h, params["w2"], params["b2"]), 0.0)
    h = jnp.maximum(lin(h, params["w3"], params["b3"]), 0.0)
    return jnp.sum(h * params["w4"], axis=-1, keepdims=True) + params["b4"]


if __name__ == "__main__":
    key = jax.random.PRNGKey(0)
    k_params, k_x1, k_x2 = jax.random.split(key, 3)

    input_size = 16
    params = init_params(k_params, input_size)

    # Small batch (single full-array block).
    x_small = jax.random.normal(k_x1, (8, input_size), dtype=jnp.float32)
    out_small = jax.block_until_ready(house_price_nn_forward(x_small, params))
    ref_small = reference_forward(x_small, params)
    assert out_small.shape == (8, 1), out_small.shape
    assert jnp.allclose(out_small, ref_small, atol=2e-3, rtol=2e-3), \
        "mismatch vs reference (small batch)"

    # Multi-tile path with a ragged last tile (grid > 1, batch not aligned).
    x_big = jax.random.normal(k_x2, (300, input_size), dtype=jnp.float32)
    out_big = jax.block_until_ready(house_price_nn_forward(x_big, params))
    ref_big = reference_forward(x_big, params)
    assert out_big.shape == (300, 1), out_big.shape
    assert jnp.allclose(out_big, ref_big, atol=2e-3, rtol=2e-3), \
        "mismatch vs reference (multi-tile batch)"

    # Explicit small-tile sweep point (3 grid steps, ragged tail).
    out_big2 = jax.block_until_ready(
        house_price_nn_forward(x_big, params, tile_b=128))
    assert jnp.allclose(out_big2, ref_big, atol=2e-3, rtol=2e-3), \
        "mismatch vs reference (tile_b=128)"

    print("KERNEL_OK")
</pallas_src>

<mosaic_0001>
module attributes {stable_mosaic.version = 11 : i64} {
  func.func @_mlp_kernel(%arg0: i32, %arg1: memref<8x16xf32, #tpu.memory_space<vmem>>, %arg2: memref<128x16xbf16, #tpu.memory_space<vmem>>, %arg3: memref<128x1xf32, #tpu.memory_space<vmem>>, %arg4: memref<64x128xbf16, #tpu.memory_space<vmem>>, %arg5: memref<64x1xf32, #tpu.memory_space<vmem>>, %arg6: memref<32x64xbf16, #tpu.memory_space<vmem>>, %arg7: memref<32x1xf32, #tpu.memory_space<vmem>>, %arg8: memref<32x1xf32, #tpu.memory_space<vmem>>, %arg9: memref<1x1xf32, #tpu.memory_space<vmem>>, %arg10: memref<1x8xf32, #tpu.memory_space<vmem>>) attributes {dimension_semantics = [#tpu.dimension_semantics<parallel>], iteration_bounds = array<i64: 1>, scalar_prefetch = 0 : i64, scratch_operands = 0 : i64, tpu.core_type = #tpu.core_type<tc>, window_params = [{transform_indices = @transform_0, window_bounds = array<i64: 8, 16>}, {pipeline_mode = #tpu.pipeline_mode<synchronous>, transform_indices = @transform_1, window_bounds = array<i64: 128, 16>}, {pipeline_mode = #tpu.pipeline_mode<synchronous>, transform_indices = @transform_2, window_bounds = array<i64: 128, 1>}, {pipeline_mode = #tpu.pipeline_mode<synchronous>, transform_indices = @transform_3, window_bounds = array<i64: 64, 128>}, {pipeline_mode = #tpu.pipeline_mode<synchronous>, transform_indices = @transform_4, window_bounds = array<i64: 64, 1>}, {pipeline_mode = #tpu.pipeline_mode<synchronous>, transform_indices = @transform_5, window_bounds = array<i64: 32, 64>}, {pipeline_mode = #tpu.pipeline_mode<synchronous>, transform_indices = @transform_6, window_bounds = array<i64: 32, 1>}, {pipeline_mode = #tpu.pipeline_mode<synchronous>, transform_indices = @transform_7, window_bounds = array<i64: 32, 1>}, {pipeline_mode = #tpu.pipeline_mode<synchronous>, transform_indices = @transform_8, window_bounds = array<i64: 1, 1>}, {transform_indices = @transform_9, window_bounds = array<i64: 1, 8>}]} {
    %c0 = arith.constant 0 : index
    %c0_0 = arith.constant 0 : index
    %0 = vector.load %arg1[%c0, %c0_0] : memref<8x16xf32, #tpu.memory_space<vmem>>, vector<8x16xf32>
    %1 = arith.truncf %0 : vector<8x16xf32> to vector<8x16xbf16>
    %c0_1 = arith.constant 0 : index
    %c0_2 = arith.constant 0 : index
    %2 = vector.load %arg2[%c0_1, %c0_2] : memref<128x16xbf16, #tpu.memory_space<vmem>>, vector<128x16xbf16>
    %cst = arith.constant dense<0.000000e+00> : vector<128x8xf32>
    %3 = tpu.matmul %2, %1, %cst {dimension_numbers = #tpu.dot_dimension_numbers<[1], [1], [0], [0], [0, 0, 1, 0], [], []>} : vector<128x16xbf16>, vector<8x16xbf16>, vector<128x8xf32> -> vector<128x8xf32>
    %c0_3 = arith.constant 0 : index
    %c0_4 = arith.constant 0 : index
    %4 = vector.load %arg3[%c0_3, %c0_4] : memref<128x1xf32, #tpu.memory_space<vmem>>, vector<128x1xf32>
    %5 = vector.broadcast %4 : vector<128x1xf32> to vector<128x8xf32>
    %6 = arith.addf %3, %5 : vector<128x8xf32>
    %cst_5 = arith.constant 0.000000e+00 : f32
    %7 = vector.broadcast %cst_5 : f32 to vector<128x8xf32>
    %8 = arith.maximumf %6, %7 : vector<128x8xf32>
    %c0_6 = arith.constant 0 : index
    %c0_7 = arith.constant 0 : index
    %9 = vector.load %arg4[%c0_6, %c0_7] : memref<64x128xbf16, #tpu.memory_space<vmem>>, vector<64x128xbf16>
    %10 = arith.truncf %8 : vector<128x8xf32> to vector<128x8xbf16>
    %cst_8 = arith.constant dense<0.000000e+00> : vector<64x8xf32>
    %11 = tpu.matmul %9, %10, %cst_8 {dimension_numbers = #tpu.dot_dimension_numbers<[1], [0], [0], [1], [0, 0, 1, 1], [], []>} : vector<64x128xbf16>, vector<128x8xbf16>, vector<64x8xf32> -> vector<64x8xf32>
    %c0_9 = arith.constant 0 : index
    %c0_10 = arith.constant 0 : index
    %12 = vector.load %arg5[%c0_9, %c0_10] : memref<64x1xf32, #tpu.memory_space<vmem>>, vector<64x1xf32>
    %13 = vector.broadcast %12 : vector<64x1xf32> to vector<64x8xf32>
    %14 = arith.addf %11, %13 : vector<64x8xf32>
    %cst_11 = arith.constant 0.000000e+00 : f32
    %15 = vector.broadcast %cst_11 : f32 to vector<64x8xf32>
    %16 = arith.maximumf %14, %15 : vector<64x8xf32>
    %c0_12 = arith.constant 0 : index
    %c0_13 = arith.constant 0 : index
    %17 = vector.load %arg6[%c0_12, %c0_13] : memref<32x64xbf16, #tpu.memory_space<vmem>>, vector<32x64xbf16>
    %18 = arith.truncf %16 : vector<64x8xf32> to vector<64x8xbf16>
    %cst_14 = arith.constant dense<0.000000e+00> : vector<32x8xf32>
    %19 = tpu.matmul %17, %18, %cst_14 {dimension_numbers = #tpu.dot_dimension_numbers<[1], [0], [0], [1], [0, 0, 1, 1], [], []>} : vector<32x64xbf16>, vector<64x8xbf16>, vector<32x8xf32> -> vector<32x8xf32>
    %c0_15 = arith.constant 0 : index
    %c0_16 = arith.constant 0 : index
    %20 = vector.load %arg7[%c0_15, %c0_16] : memref<32x1xf32, #tpu.memory_space<vmem>>, vector<32x1xf32>
    %21 = vector.broadcast %20 : vector<32x1xf32> to vector<32x8xf32>
    %22 = arith.addf %19, %21 : vector<32x8xf32>
    %cst_17 = arith.constant 0.000000e+00 : f32
    %23 = vector.broadcast %cst_17 : f32 to vector<32x8xf32>
    %24 = arith.maximumf %22, %23 : vector<32x8xf32>
    %c0_18 = arith.constant 0 : index
    %c0_19 = arith.constant 0 : index
    %25 = vector.load %arg8[%c0_18, %c0_19] : memref<32x1xf32, #tpu.memory_space<vmem>>, vector<32x1xf32>
    %26 = vector.broadcast %25 : vector<32x1xf32> to vector<32x8xf32>
    %27 = arith.mulf %24, %26 : vector<32x8xf32>
    %cst_20 = arith.constant dense<0.000000e+00> : vector<8xf32>
    %28 = vector.multi_reduction <add>, %27, %cst_20 [0] : vector<32x8xf32> to vector<8xf32>
    %29 = vector.shape_cast %28 : vector<8xf32> to vector<1x8xf32>
    %c0_21 = arith.constant 0 : index
    %c0_22 = arith.constant 0 : index
    %30 = vector.load %arg9[%c0_21, %c0_22] : memref<1x1xf32, #tpu.memory_space<vmem>>, vector<1x1xf32>
    %31 = vector.broadcast %30 : vector<1x1xf32> to vector<1x8xf32>
    %32 = arith.addf %29, %31 : vector<1x8xf32>
    %c0_23 = arith.constant 0 : index
    %c0_24 = arith.constant 0 : index
    %33 = vector.load %arg10[%c0_23, %c0_24] : memref<1x8xf32, #tpu.memory_space<vmem>>, vector<1x8xf32>
    tpu.vector_store %arg10[%c0_23, %c0_24], %32 {strides = array<i32>} : memref<1x8xf32, #tpu.memory_space<vmem>>, vector<1x8xf32>,
    return
  }
  func.func @transform_0(%arg0: i32) -> (i32, i32) {
    %c0_i32 = arith.constant 0 : i32
    %c0_i32_0 = arith.constant 0 : i32
    return %arg0, %c0_i32 : i32, i32
  }
  func.func @transform_1(%arg0: i32) -> (i32, i32) {
    %c0_i32 = arith.constant 0 : i32
    %c0_i32_0 = arith.constant 0 : i32
    %c0_i32_1 = arith.constant 0 : i32
    return %c0_i32, %c0_i32_0 : i32, i32
  }
  func.func @transform_2(%arg0: i32) -> (i32, i32) {
    %c0_i32 = arith.constant 0 : i32
    %c0_i32_0 = arith.constant 0 : i32
    %c0_i32_1 = arith.constant 0 : i32
    return %c0_i32, %c0_i32_0 : i32, i32
  }
  func.func @transform_3(%arg0: i32) -> (i32, i32) {
    %c0_i32 = arith.constant 0 : i32
    %c0_i32_0 = arith.constant 0 : i32
    %c0_i32_1 = arith.constant 0 : i32
    return %c0_i32, %c0_i32_0 : i32, i32
  }
  func.func @transform_4(%arg0: i32) -> (i32, i32) {
    %c0_i32 = arith.constant 0 : i32
    %c0_i32_0 = arith.constant 0 : i32
    %c0_i32_1 = arith.constant 0 : i32
    return %c0_i32, %c0_i32_0 : i32, i32
  }
  func.func @transform_5(%arg0: i32) -> (i32, i32) {
    %c0_i32 = arith.constant 0 : i32
    %c0_i32_0 = arith.constant 0 : i32
    %c0_i32_1 = arith.constant 0 : i32
    return %c0_i32, %c0_i32_0 : i32, i32
  }
  func.func @transform_6(%arg0: i32) -> (i32, i32) {
    %c0_i32 = arith.constant 0 : i32
    %c0_i32_0 = arith.constant 0 : i32
    %c0_i32_1 = arith.constant 0 : i32
    return %c0_i32, %c0_i32_0 : i32, i32
  }
  func.func @transform_7(%arg0: i32) -> (i32, i32) {
    %c0_i32 = arith.constant 0 : i32
    %c0_i32_0 = arith.constant 0 : i32
    %c0_i32_1 = arith.constant 0 : i32
    return %c0_i32, %c0_i32_0 : i32, i32
  }
  func.func @transform_8(%arg0: i32) -> (i32, i32) {
    %c0_i32 = arith.constant 0 : i32
    %c0_i32_0 = arith.constant 0 : i32
    %c0_i32_1 = arith.constant 0 : i32
    return %c0_i32, %c0_i32_0 : i32, i32
  }
  func.func @transform_9(%arg0: i32) -> (i32, i32) {
    %c0_i32 = arith.constant 0 : i32
    %c0_i32_0 = arith.constant 0 : i32
    return %c0_i32, %arg0 : i32, i32
  }
}

</mosaic_0001>

<bundles_post_ra>
// kernel: tpu_custom_call.1
= control target key start
LH: loop header
LB: loop body
LE: loop exit
PB: predicated region body
PF: predicated region fallthrough
CT: control target
= control target key end

     0   :  { %s882_s0 = inlined_call_operand.vmem [shape: f32[8,16], index: 0, kind: input, shape index: {}]   ;;  %s883_s1 = inlined_call_operand.vmem [shape: bf16[128,16], index: 1, kind: input, shape index: {}]   ;;  %s884_s2 = inlined_call_operand.vmem [shape: f32[128,1], index: 2, kind: input, shape index: {}]   ;;  %s885_s3 = inlined_call_operand.vmem [shape: bf16[64,128], index: 3, kind: input, shape index: {}]   ;;  %s886_s4 = inlined_call_operand.vmem [shape: f32[64,1], index: 4, kind: input, shape index: {}]   ;;  %s887_s5 = inlined_call_operand.vmem [shape: bf16[32,64], index: 5, kind: input, shape index: {}]   ;;  %s888_s6 = inlined_call_operand.vmem [shape: f32[32,1], index: 6, kind: input, shape index: {}]   ;;  %s889_s7 = inlined_call_operand.vmem [shape: f32[32,1], index: 7, kind: input, shape index: {}]   ;;  %s890_s8 = inlined_call_operand.<no memory space> [shape: f32[1,1], index: 8, kind: input, shape index: {}]   ;;  %s891_s9 = inlined_call_operand.hbm [shape: f32[1,8], index: 9, kind: output, shape index: {}]  }
   0x1   :  { %v14_v0 = vstv %s890_s8 }
   0x2   :  { %15 = vst [vmem:[#allocation2] sm:$0x1] %v14_v0 }
   0x3   :  { %v68_v1 = vld [vmem:[%s884_s2 + $0x70] sm:$0xff]  ;;  %v66_v2 = vld [vmem:[%s884_s2 + $0x60] sm:$0xff]  ;;  %vm190_vm0 = vcmask 130048   ;;  %v668_v4 = vmov 0   ;;  %v69_v8 = vld [vmem:[%s884_s2 + $0x78] sm:$0xff] }
   0x4   :  { %v36_v3 = vld [vmem:[%s882_s0] sm:$0xff]  ;;  %640 = vset.pattern.permute.xlu1 %v668_v4  ;;  %639 = vset.pattern.permute.xlu0 %v668_v4  ;;  %v64_v7 = vld [vmem:[%s884_s2 + $0x50] sm:$0xff] }
   0x5   :  { %v37_v5 = vpack.c.bf16 %v36_v3, %v36_v3  ;;  %142 = vperm.xlu0 %639, %v68_v1   ;;  %132 = vperm.xlu1 %640, %v66_v2  }
   0x6   :  { %641 = vset.pattern.permute.xlu2 %v668_v4 }
   0x7   :  { %v216_v6 = vsel %vm190_vm0, %v37_v5, 0  ;;  %122 = vperm.xlu2 %641, %v64_v7  }
   0x8   :  { %225 = vmatpush.bf16.xpose.msra.mxu0 %v216_v6  ;;  %628 = vmatpush.bf16.xpose.msra.mxu3 %v216_v6 }
   0x9   :  { %16 = vsyncpa [#allocation4], 0  ;;  %v67_v9 = vld [vmem:[%s884_s2 + $0x68] sm:$0xff]  ;;  %v614_v10 = vld [vmem:[%s883_s1] sm:$0xff]  ;;  %vm450_vm1 = vcmask 523264   ;;  %vm508_vm2 = vcmask 64512  }
   0xa   :  { %v618_v11 = vld [vmem:[%s883_s1 + $0x20] sm:$0xff]  ;;  %v65_v12 = vld [vmem:[%s884_s2 + $0x58] sm:$0xff]  ;;  %v63_v13 = vld [vmem:[%s884_s2 + $0x48] sm:$0xff]  ;;  %s539_s30 = sshll.u32 %s891_s9, 4  ;;  %vm530_vm3 = vcmask 57344   ;;  %s540_s30 = int_to_ptr.hbm [resolvable:$true] %s539_s30 }
   0xb   :  { %v62_v14 = vld [vmem:[%s884_s2 + $0x40] sm:$0xff]  ;;  %v60_v15 = vld [vmem:[%s884_s2 + $0x30] sm:$0xff]  ;;  %v61_v16 = vld [vmem:[%s884_s2 + $0x38] sm:$0xff] }
   0xc   :  { %v58_v17 = vld [vmem:[%s884_s2 + $0x20] sm:$0xff]  ;;  %v615_v18 = vld [vmem:[%s883_s1 + $0x8] sm:$0xff]  ;;  %v57_v21 = vld [vmem:[%s884_s2 + $0x18] sm:$0xff] }
   0xd   :  { %147 = vperm.xlu0 %639, %v69_v8   ;;  %137 = vperm.xlu1 %640, %v67_v9   ;;  %v619_v19 = vld [vmem:[%s883_s1 + $0x28] sm:$0xff]  ;;  %v56_v22 = vld [vmem:[%s884_s2 + $0x10] sm:$0xff]  ;;  %v54_v23 = vld [vmem:[%s884_s2] sm:$0xff] }
   0xe   :  { %v59_v20 = vld [vmem:[%s884_s2 + $0x28] sm:$0xff]  ;;  %v305_v24 = vld [vmem:[%s886_s4 + $0x30] sm:$0xff]  ;;  %v306_v28 = vld [vmem:[%s886_s4 + $0x38] sm:$0xff] }
   0xf   :  { %580 = vmatmul.msk.bf16.vlgmr.msra.gmra.mxu0 %vm190_vm0, %v614_v10  ;;  %584 = vmatmul.msk.bf16.vlgmr.msra.gmra.mxu3 %vm190_vm0, %v618_v11  ;;  %v55_v25 = vld [vmem:[%s884_s2 + $0x8] sm:$0xff]  ;;  %v616_v26 = vld [vmem:[%s883_s1 + $0x10] sm:$0xff]  ;;  %v303_v30 = vld [vmem:[%s886_s4 + $0x20] sm:$0xff] }
  0x10   :  { %127 = vperm.xlu2 %641, %v65_v12   ;;  %v620_v27 = vld [vmem:[%s883_s1 + $0x30] sm:$0xff]  ;;  %v304_v29 = vld [vmem:[%s886_s4 + $0x28] sm:$0xff]  ;;  %v299_v32 = vld [vmem:[%s886_s4] sm:$0xff] }
  0x11   :  { %v301_v31 = vld [vmem:[%s886_s4 + $0x10] sm:$0xff]  ;;  %v302_v33 = vld [vmem:[%s886_s4 + $0x18] sm:$0xff]  ;;  %v300_v36 = vld [vmem:[%s886_s4 + $0x8] sm:$0xff] }
  0x12   :  { %v617_v34 = vld [vmem:[%s883_s1 + $0x18] sm:$0xff]  ;;  %v417_v37 = vld [vmem:[%s888_s6 + $0x8] sm:$0xff]  ;;  %v416_v38 = vld [vmem:[%s888_s6] sm:$0xff] }
  0x13   :  { %v621_v35 = vld [vmem:[%s883_s1 + $0x38] sm:$0xff]  ;;  %v418_v39 = vld [vmem:[%s888_s6 + $0x10] sm:$0xff]  ;;  %v480_v40 = vld [vmem:[%s889_s7] sm:$0xff] }
  0x14   :  { %v419_v41 = vld [vmem:[%s888_s6 + $0x18] sm:$0xff]  ;;  %v481_v42 = vld [vmem:[%s889_s7 + $0x8] sm:$0xff]  ;;  %v482_v44 = vld [vmem:[%s889_s7 + $0x10] sm:$0xff] }
  0x15   :  { %117 = vperm.xlu1 %640, %v63_v13   ;;  %112 = vperm.xlu0 %639, %v62_v14   ;;  %v483_v43 = vld [vmem:[%s889_s7 + $0x18] sm:$0xff]  ;;  %v522_v45 = vld [vmem:[#allocation2] sm:$0x1] }
  0x18   :  { %102 = vperm.xlu2 %641, %v60_v15  }
  0x1d   :  { %107 = vperm.xlu0 %639, %v61_v16   ;;  %92 = vperm.xlu1 %640, %v58_v17  }
  0x1f   :  { %581 = vmatmul.msk.bf16.gmra.mxu0 %vm190_vm0, %v615_v18  ;;  %585 = vmatmul.msk.bf16.gmra.mxu3 %vm190_vm0, %v619_v19 }
  0x20   :  { %97 = vperm.xlu2 %641, %v59_v20  }
  0x25   :  { %87 = vperm.xlu1 %640, %v57_v21   ;;  %82 = vperm.xlu0 %639, %v56_v22  }
  0x28   :  { %72 = vperm.xlu2 %641, %v54_v23  }
  0x2d   :  { %339 = vperm.xlu1 %640, %v305_v24   ;;  %77 = vperm.xlu0 %639, %v55_v25  }
  0x2f   :  { %582 = vmatmul.msk.bf16.gmra.mxu0 %vm190_vm0, %v616_v26  ;;  %586 = vmatmul.msk.bf16.gmra.mxu3 %vm190_vm0, %v620_v27 }
  0x30   :  { %344 = vperm.xlu2 %641, %v306_v28  }
  0x35   :  { %334 = vperm.xlu1 %640, %v304_v29   ;;  %329 = vperm.xlu0 %639, %v303_v30  }
  0x38   :  { %319 = vperm.xlu2 %641, %v301_v31  }
  0x3d   :  { %309 = vperm.xlu1 %640, %v299_v32   ;;  %324 = vperm.xlu0 %639, %v302_v33  }
  0x3f   :  { %583 = vmatmul.msk.bf16.gmra.mxu0 %vm190_vm0, %v617_v34  ;;  %587 = vmatmul.msk.bf16.gmra.mxu3 %vm190_vm0, %v621_v35 }
  0x40   :  { %314 = vperm.xlu2 %641, %v300_v36  }
  0x45   :  { %427 = vperm.xlu1 %640, %v417_v37   ;;  %422 = vperm.xlu0 %639, %v416_v38  }
  0x48   :  { %432 = vperm.xlu2 %641, %v418_v39  }
  0x4d   :  { %486 = vperm.xlu1 %640, %v480_v40   ;;  %437 = vperm.xlu0 %639, %v419_v41  }
  0x50   :  { %491 = vperm.xlu2 %641, %v481_v42  }
  0x55   :  { %501 = vperm.xlu1 %640, %v483_v43   ;;  %496 = vperm.xlu0 %639, %v482_v44  }
  0x58   :  { %525 = vperm.xlu2 %641, %v522_v45  }
  0x61   :  { %v123_v58 = vpop.permute.xlu2 %122 }
  0x6a   :  { %v128_v0 = vpop.permute.xlu2 %127 }
  0x72   :  { %v103_v8 = vpop.permute.xlu2 %102 }
  0x77   :  { %v143_v54 = vpop.permute.xlu0 %142  ;;  %v133_v56 = vpop.permute.xlu1 %132 }
  0x7a   :  { %v98_v26 = vpop.permute.xlu2 %97 }
  0x7f   :  { %v148_v59 = vpop.permute.xlu0 %147  ;;  %v138_v61 = vpop.permute.xlu1 %137 }
  0x82   :  { %v73_v43 = vpop.permute.xlu2 %72 }
  0x87   :  { %v113_v1 = vpop.permute.xlu0 %112  ;;  %v118_v2 = vpop.permute.xlu1 %117 }
  0x8c   :  { %v855_v46 = vpop.f32.mrf.mxu0 }
  0x8d   :  { %v228_v44 = vadd.f32 %v855_v46, %v73_v43  ;;  %v625_v46 = vld [vmem:[%s885_s3 + $0x18] sm:$0xff] }
  0x8f   :  { %v108_v12 = vpop.permute.xlu0 %107  ;;  %v93_v21 = vpop.permute.xlu1 %92 }
  0x92   :  { %v247_v47 = vpop.f32.mrf.mxu3 }
  0x93   :  { %v248_v22 = vadd.f32 %v247_v47, %v113_v1 }
  0x94   :  { %v857_v48 = vpop.f32.mrf.mxu0 }
  0x95   :  { %v275_v30 = vmax.f32 %v248_v22, 0.0 }
  0x97   :  { %v83_v31 = vpop.permute.xlu0 %82  ;;  %v88_v37 = vpop.permute.xlu1 %87 }
  0x9a   :  { %v249_v49 = vpop.f32.mrf.mxu3 }
  0x9b   :  { %v250_v18 = vadd.f32 %v249_v49, %v118_v2 }
  0x9c   :  { %v232_v50 = vpop.f32.mrf.mxu0 }
  0x9d   :  { %v276_v25 = vmax.f32 %v250_v18, 0.0  ;;  %v233_v38 = vadd.f32 %v232_v50, %v83_v31  ;;  %v627_v31 = vld [vmem:[%s887_s5 + $0x8] sm:$0xff] }
  0x9f   :  { %v295_v32 = vpack.c.bf16 %v276_v25, %v275_v30  ;;  %v78_v45 = vpop.permute.xlu0 %77  ;;  %v269_v47 = vmax.f32 %v233_v38, 0.0  ;;  %v626_v30 = vld [vmem:[%s887_s5] sm:$0xff]  ;;  %s669_s5 = smov [#allocation3]  }
  0xa0   :  { %v230_v49 = vadd.f32 %v857_v48, %v78_v45  ;;  %v623_v48 = vld [vmem:[%s885_s3 + $0x8] sm:$0xff]  ;;  %s537_s27 = sshll.u32 %s669_s5, 4  ;;  %s538_s27 = int_to_ptr.vmem [resolvable:$true] %s537_s27 }
  0xa2   :  { %v252_v51 = vpop.f32.mrf.mxu3 }
  0xa3   :  { %v253_v16 = vadd.f32 %v252_v51, %v123_v58 }
  0xa4   :  { %v234_v53 = vpop.f32.mrf.mxu0 }
  0xa5   :  { %v277_v24 = vmax.f32 %v253_v16, 0.0  ;;  %v235_v39 = vadd.f32 %v234_v53, %v88_v37 }
  0xa7   :  { %v270_v51 = vmax.f32 %v235_v39, 0.0 }
  0xa9   :  { %v292_v50 = vpack.c.bf16 %v270_v51, %v269_v47 }
  0xaa   :  { %v254_v52 = vpop.f32.mrf.mxu3 }
  0xab   :  { %v255_v13 = vadd.f32 %v254_v52, %v128_v0 }
  0xac   :  { %v237_v57 = vpop.f32.mrf.mxu0 }
  0xad   :  { %v278_v19 = vmax.f32 %v255_v13, 0.0  ;;  %v238_v33 = vadd.f32 %v237_v57, %v93_v21  ;;  %v624_v57 = vld [vmem:[%s885_s3 + $0x10] sm:$0xff] }
  0xaf   :  { %v296_v29 = vpack.c.bf16 %v278_v19, %v277_v24  ;;  %v271_v40 = vmax.f32 %v238_v33, 0.0 }
  0xb2   :  { %v257_v55 = vpop.f32.mrf.mxu3 }
  0xb3   :  { %v258_v9 = vadd.f32 %v257_v55, %v133_v56  ;;  %v268_v55 = vmax.f32 %v230_v49, 0.0  ;;  %v622_v56 = vld [vmem:[%s885_s3] sm:$0xff] }
  0xb4   :  { %v239_v62 = vpop.f32.mrf.mxu0 }
  0xb5   :  { %v279_v17 = vmax.f32 %v258_v9, 0.0  ;;  %v240_v34 = vadd.f32 %v239_v62, %v98_v26 }
  0xb7   :  { %v272_v41 = vmax.f32 %v240_v34, 0.0 }
  0xb9   :  { %v293_v52 = vpack.c.bf16 %v272_v41, %v271_v40 }
  0xba   :  { %v259_v60 = vpop.f32.mrf.mxu3 }
  0xbb   :  { %v260_v6 = vadd.f32 %v259_v60, %v138_v61  ;;  %v340_v61 = vpop.permute.xlu1 %339 }
  0xbc   :  { %v242_v4 = vpop.f32.mrf.mxu0 }
  0xbd   :  { %v280_v14 = vmax.f32 %v260_v6, 0.0  ;;  %v243_v27 = vadd.f32 %v242_v4, %v103_v8 }
  0xbf   :  { %v297_v20 = vpack.c.bf16 %v280_v14, %v279_v17  ;;  %v273_v35 = vmax.f32 %v243_v27, 0.0 }
  0xc2   :  { %v262_v63 = vpop.f32.mrf.mxu3 }
  0xc3   :  { %v263_v3 = vadd.f32 %v262_v63, %v143_v54  ;;  %v267_v54 = vmax.f32 %v228_v44, 0.0  ;;  %v345_v63 = vpop.permute.xlu2 %344 }
  0xc4   :  { %v244_v23 = vpop.f32.mrf.mxu0 }
  0xc5   :  { %v281_v10 = vmax.f32 %v263_v3, 0.0  ;;  %v245_v28 = vadd.f32 %v244_v23, %v108_v12  ;;  %v291_v53 = vpack.c.bf16 %v268_v55, %v267_v54 }
  0xc7   :  { %v274_v36 = vmax.f32 %v245_v28, 0.0 }
  0xc9   :  { %v294_v42 = vpack.c.bf16 %v274_v36, %v273_v35 }
  0xca   :  { %v264_v5 = vpop.f32.mrf.mxu3 }
  0xcb   :  { %v265_v7 = vadd.f32 %v264_v5, %v148_v59  ;;  %v320_v9 = vpop.permute.xlu2 %319 }
  0xcd   :  { %v282_v11 = vmax.f32 %v265_v7, 0.0  ;;  %v330_v7 = vpop.permute.xlu0 %329 }
  0xcf   :  { %v298_v15 = vpack.c.bf16 %v282_v11, %v281_v10  ;;  %v335_v10 = vpop.permute.xlu1 %334 }
  0xd1   :  { %371 = vmatpush.bf16.msra.mxu1 %v298_v15  ;;  %629 = vmatpush.bf16.msra.mxu2 %v298_v15 }
  0xd3   :  { %v315_v19 = vpop.permute.xlu2 %314 }
  0xd5   :  { %372 = vmatpush.bf16.msra.mxu1 %v297_v20  ;;  %630 = vmatpush.bf16.msra.mxu2 %v297_v20  ;;  %v325_v12 = vpop.permute.xlu0 %324 }
  0xd7   :  { %v310_v23 = vpop.permute.xlu1 %309 }
  0xd9   :  { %373 = vmatpush.bf16.msra.mxu1 %v296_v29  ;;  %631 = vmatpush.bf16.msra.mxu2 %v296_v29 }
  0xdb   :  { %v433_v36 = vpop.permute.xlu2 %432 }
  0xdd   :  { %374 = vmatpush.bf16.msra.mxu1 %v295_v32  ;;  %632 = vmatpush.bf16.msra.mxu2 %v295_v32  ;;  %v423_v33 = vpop.permute.xlu0 %422 }
  0xdf   :  { %v428_v34 = vpop.permute.xlu1 %427 }
  0xe1   :  { %375 = vmatpush.bf16.msra.mxu1 %v294_v42  ;;  %633 = vmatpush.bf16.msra.mxu2 %v294_v42 }
  0xe3   :  { %v492_v47 = vpop.permute.xlu2 %491 }
  0xe5   :  { %376 = vmatpush.bf16.msra.mxu1 %v293_v52  ;;  %634 = vmatpush.bf16.msra.mxu2 %v293_v52  ;;  %v438_v37 = vpop.permute.xlu0 %437 }
  0xe7   :  { %v487_v43 = vpop.permute.xlu1 %486 }
  0xe9   :  { %377 = vmatpush.bf16.msra.mxu1 %v292_v50  ;;  %635 = vmatpush.bf16.msra.mxu2 %v292_v50 }
  0xed   :  { %378 = vmatpush.bf16.msra.mxu1 %v291_v53  ;;  %636 = vmatpush.bf16.msra.mxu2 %v291_v53  ;;  %v497_v51 = vpop.permute.xlu0 %496 }
  0xf0   :  { %379 = vmatmul.bf16.vlgmr.msra.gmra.mxu1 %v622_v56  ;;  %394 = vmatmul.bf16.vlgmr.msra.gmra.mxu2 %v625_v46 }
 0x100   :  { %384 = vmatmul.bf16.gmra.mxu1 %v623_v48 }
 0x110   :  { %389 = vmatmul.bf16.gmra.mxu1 %v624_v57  ;;  %v502_v57 = vpop.permute.xlu1 %501 }
 0x16d   :  { %v380_v58 = vpop.f32.mrf.mxu1 }
 0x16e   :  { %v381_v24 = vadd.f32 %v380_v58, %v310_v23 }
 0x170   :  { %v400_v28 = vmax.f32 %v381_v24, 0.0 }
 0x173   :  { %v395_v59 = vpop.f32.mrf.mxu2 }
 0x174   :  { %v396_v62 = vadd.f32 %v395_v59, %v340_v61 }
 0x175   :  { %v382_v60 = vpop.f32.mrf.mxu1 }
 0x176   :  { %v406_v3 = vmax.f32 %v396_v62, 0.0  ;;  %v383_v20 = vadd.f32 %v382_v60, %v315_v19 }
 0x178   :  { %v401_v26 = vmax.f32 %v383_v20, 0.0 }
 0x17a   :  { %v412_v29 = vpack.c.bf16 %v401_v26, %v400_v28 }
 0x17b   :  { %v397_v0 = vpop.f32.mrf.mxu2 }
 0x17c   :  { %v398_v1 = vadd.f32 %v397_v0, %v345_v63 }
 0x17d   :  { %v385_v2 = vpop.f32.mrf.mxu1 }
 0x17e   :  { %v407_v4 = vmax.f32 %v398_v1, 0.0  ;;  %v386_v16 = vadd.f32 %v385_v2, %v320_v9 }
 0x180   :  { %v415_v5 = vpack.c.bf16 %v407_v4, %v406_v3  ;;  %v402_v25 = vmax.f32 %v386_v16, 0.0  ;;  %v526_v3 = vpop.permute.xlu2 %525 }
 0x182   :  { %461 = vmatpush.bf16.msrb.mxu2 %v415_v5  ;;  %v528_v5 = vperm.slane %v526_v3, 0 }
 0x185   :  { %v387_v6 = vpop.f32.mrf.mxu1 }
 0x186   :  { %v388_v14 = vadd.f32 %v387_v6, %v325_v12 }
 0x188   :  { %v403_v21 = vmax.f32 %v388_v14, 0.0 }
 0x18a   :  { %v413_v27 = vpack.c.bf16 %v403_v21, %v402_v25 }
 0x18d   :  { %v390_v8 = vpop.f32.mrf.mxu1 }
 0x18e   :  { %v391_v11 = vadd.f32 %v390_v8, %v330_v7 }
 0x190   :  { %v404_v17 = vmax.f32 %v391_v11, 0.0 }
 0x195   :  { %v392_v13 = vpop.f32.mrf.mxu1 }
 0x196   :  { %v393_v15 = vadd.f32 %v392_v13, %v335_v10 }
 0x198   :  { %v405_v18 = vmax.f32 %v393_v15, 0.0 }
 0x19a   :  { %v414_v22 = vpack.c.bf16 %v405_v18, %v404_v17 }
 0x19c   :  { %462 = vmatpush.bf16.msrb.mxu2 %v414_v22 }
 0x1a0   :  { %463 = vmatpush.bf16.msrb.mxu2 %v413_v27 }
 0x1a4   :  { %464 = vmatpush.bf16.msrb.mxu2 %v412_v29 }
 0x1a7   :  { %612 = vmatmul.msk.bf16.vlgmr.msrb.gmra.mxu2 %vm450_vm1, %v626_v30 }
 0x1b7   :  { %613 = vmatmul.msk.bf16.gmra.mxu2 %vm450_vm1, %v627_v31 }
 0x22a   :  { %v466_v32 = vpop.f32.mrf.mxu2 }
 0x22b   :  { %v467_v39 = vadd.f32 %v466_v32, %v423_v33 }
 0x22d   :  { %v476_v44 = vmax.f32 %v467_v39, 0.0 }
 0x22f   :  { %v504_v52 = vmul.f32 %v487_v43, %v476_v44 }
 0x231   :  { %v509_v56 = vsel %vm508_vm2, %v504_v52, 0.0 }
 0x232   :  { %v468_v35 = vpop.f32.mrf.mxu2 }
 0x233   :  { %v469_v38 = vadd.f32 %v468_v35, %v428_v34 }
 0x235   :  { %v477_v41 = vmax.f32 %v469_v38, 0.0 }
 0x237   :  { %v505_v49 = vmul.f32 %v492_v47, %v477_v41 }
 0x239   :  { %v510_v50 = vsel %vm508_vm2, %v505_v49, 0.0 }
 0x23a   :  { %v471_v40 = vpop.f32.mrf.mxu2  ;;  %v511_v58 = vadd.f32 %v510_v50, %v509_v56 }
 0x23b   :  { %v472_v42 = vadd.f32 %v471_v40, %v433_v36 }
 0x23d   :  { %v478_v45 = vmax.f32 %v472_v42, 0.0 }
 0x23f   :  { %v506_v54 = vmul.f32 %v497_v51, %v478_v45 }
 0x241   :  { %v512_v46 = vsel %vm508_vm2, %v506_v54, 0.0 }
 0x242   :  { %v473_v55 = vpop.f32.mrf.mxu2  ;;  %v513_v60 = vadd.f32 %v512_v46, %v511_v58 }
 0x243   :  { %v474_v53 = vadd.f32 %v473_v55, %v438_v37 }
 0x245   :  { %v479_v48 = vmax.f32 %v474_v53, 0.0 }
 0x247   :  { %v507_v59 = vmul.f32 %v502_v57, %v479_v48 }
 0x249   :  { %v514_v61 = vsel %vm508_vm2, %v507_v59, 0.0 }
 0x24a   :  { %v515_v62 = vadd.f32 %v514_v61, %v513_v60 }
 0x24c   :  { %v516_v63 = vrot.slane %v515_v62, 4 }
 0x24e   :  { %v517_v0 = vadd.f32 %v516_v63, %v515_v62 }
 0x250   :  { %v518_v1 = vrot.slane %v517_v0, 2 }
 0x252   :  { %v519_v2 = vadd.f32 %v518_v1, %v517_v0 }
 0x254   :  { %v520_v4 = vrot.slane %v519_v2, 1 }
 0x256   :  { %v521_v6 = vadd.f32 %v520_v4, %v519_v2 }
 0x258   :  { %v529_v7 = vadd.f32 %v528_v5, %v521_v6 }
 0x25a   :  { %531 = vst.msk [vmem:[#allocation3] sm:$0x1] %vm530_vm3, %v529_v7 }
 0x25b   :  { %542 = dma.vmem_to_hbm [thread:$0]  %s538_s27, 16, %s540_s30, [#allocation4]  }
 0x25c   :  { %666 = dma.done.wait [#allocation4], 16  }
 0x25d   :  { %667 = vsyncadd [#allocation4], 4294967280 }
 0x25e   :  { %547 = vsyncpa [#allocation4], 1 }

</bundles_post_ra>
